<compile_context>
chip_gen: v7x
topology: tpu7x:2x2x1
jax: 0.10.0
libtpu: 0.0.40
codegen_flags: <defaults>
</compile_context>

<pallas_src>
import functools
import math

import jax
import jax.numpy as jnp
import numpy as np
from jax.experimental import pallas as pl
from jax.experimental.pallas import tpu as pltpu

QUANT_TYPE = "INT"   # TODO(synk): 'POT'/'FLOAT' quant needs the global plist table (gol.get_value)
NUM_BITS = 8
QMAX = 2.0 ** (NUM_BITS - 1) - 1  # 127.0
_EPS = 1e-12         # guard against all-zero tensors (scale == 0 -> inf/NaN)


def _round_up(v, m):
    return ((v + m - 1) // m) * m


# ---------------- Pallas kernels ----------------

def _gemm_fq_kernel(scales_ref, x_ref, w_ref, b_ref, y_ref, amax_ref, wq_ref,
                    *, qmax, m_real, tm):
    """Fused: fake-quant(x) -> integer bf16 GEMM -> rescale + bias -> tile abs-max.

    scales_ref (SMEM scalar prefetch): [1/scale_i, 1/scale_w, scale_i*scale_w]
    wq_ref  : resident bf16 scratch with quantized weights (filled once at i==0).
    amax_ref: resident (1,128) accumulator, running abs-max of the real-row
              output; read back in the wrapper to derive scale_o.
    """
    i = pl.program_id(0)
    inv_si = scales_ref[0]
    inv_sw = scales_ref[1]
    s_prod = scales_ref[2]

    @pl.when(i == 0)
    def _():
        # One-time weight fake-quant (hoisted out of the M loop).  Integer
        # values in [-127, 127] are exactly representable in bf16.
        qw = jnp.round(jnp.clip(w_ref[...] * inv_sw, -qmax, qmax))
        wq_ref[...] = qw.astype(jnp.bfloat16)
        amax_ref[...] = jnp.zeros_like(amax_ref)

    # Input fake-quant: each row tile visited exactly once, f32 elementwise
    # math, cast to bf16 only at the MXU boundary.
    qx = jnp.round(jnp.clip(x_ref[...] * inv_si, -qmax, qmax)).astype(jnp.bfloat16)

    # Single-pass bf16 MXU matmul with f32 accumulation (exact integer sums).
    acc = jnp.dot(qx, wq_ref[...], preferred_element_type=jnp.float32)

    # (s_i*q_x) @ (s_w*q_w) == s_i*s_w*(q_x @ q_w); bias added unquantized
    # (the module's forward uses the raw fc bias).
    y = acc * s_prod + b_ref[...]
    y_ref[...] = y

    # Fused qo.update statistics: abs-max over *real* rows only (padded rows
    # would otherwise contribute |bias|); padded weight/bias columns are zero.
    rows = jax.lax.broadcasted_iota(jnp.int32, y.shape, 0) + i * tm
    tile_max = jnp.max(jnp.where(rows < m_real, jnp.abs(y), 0.0))
    amax_ref[...] = jnp.maximum(amax_ref[...], tile_max)


def _out_fq_kernel(scales_ref, y_ref, o_ref, *, qmax):
    """Elementwise output fake-quant on lane-dense (tm, Npad) blocks."""
    inv_so = scales_ref[0]
    s_o = scales_ref[1]
    q = jnp.round(jnp.clip(y_ref[...] * inv_so, -qmax, qmax))
    o_ref[...] = s_o * q


# ---------------- wrapper (plain JAX glue) ----------------

def _choose_tm(m, kpad, npad, desired=512, vmem_budget=20 * 1024 * 1024):
    """Largest row tile (multiple of 8) whose pipeline buffers fit the budget."""
    tm = min(desired, _round_up(m, 8))
    while tm > 8:
        need = (2 * tm * kpad * 4          # double-buffered f32 input tile
                + 2 * tm * npad * 4        # double-buffered f32 output tile
                + kpad * npad * (4 + 2))   # resident f32 weights + bf16 scratch
        if need <= vmem_budget:
            break
        tm //= 2
    return max(tm, 8)


def qlinear_forward(x, weight, bias, tm=512):
    """QLinear.forward (quant_type='INT', num_bits=8): fake-quant input and
    weight, f32 linear + bias, fake-quant output."""
    *lead, k = x.shape
    n = weight.shape[0]
    x2d = x.reshape(-1, k).astype(jnp.float32)
    m = x2d.shape[0]

    # qi / qw update: tiny global abs-max reductions, kept as JAX glue.
    scale_i = jnp.maximum(jnp.max(jnp.abs(x2d)), _EPS) / QMAX
    scale_w = jnp.maximum(jnp.max(jnp.abs(weight)), _EPS) / QMAX
    scales_iw = jnp.stack([1.0 / scale_i, 1.0 / scale_w,
                           scale_i * scale_w]).astype(jnp.float32)

    # Lane-dense padding: contraction and output dims to multiples of 128.
    kpad = _round_up(k, 128)
    npad = _round_up(n, 128)
    tm = _choose_tm(m, kpad, npad, desired=tm)
    mp = _round_up(m, tm)

    xp = jnp.pad(x2d, ((0, mp - m), (0, kpad - k)))
    wt = jnp.pad(weight.astype(jnp.float32).T, ((0, kpad - k), (0, npad - n)))
    bp = jnp.pad(bias.astype(jnp.float32).reshape(1, n), ((0, 0), (0, npad - n)))

    grid_m = mp // tm
    gemm = functools.partial(_gemm_fq_kernel, qmax=QMAX, m_real=m, tm=tm)
    # TODO(synk): tile K/N for AlexNet-sized FC layers (weights fully resident here).
    y2d, amax = pl.pallas_call(
        gemm,
        out_shape=(jax.ShapeDtypeStruct((mp, npad), jnp.float32),
                   jax.ShapeDtypeStruct((1, 128), jnp.float32)),
        grid_spec=pltpu.PrefetchScalarGridSpec(
            num_scalar_prefetch=1,
            grid=(grid_m,),
            in_specs=[
                pl.BlockSpec((tm, kpad), lambda i, s: (i, 0)),
                pl.BlockSpec((kpad, npad), lambda i, s: (0, 0)),
                pl.BlockSpec((1, npad), lambda i, s: (0, 0)),
            ],
            out_specs=[
                pl.BlockSpec((tm, npad), lambda i, s: (i, 0)),
                pl.BlockSpec((1, 128), lambda i, s: (0, 0)),
            ],
            scratch_shapes=[pltpu.VMEM((kpad, npad), jnp.bfloat16)],
        ),
        compiler_params=pltpu.CompilerParams(
            dimension_semantics=("arbitrary",),   # resident amax / wq accumulators
            vmem_limit_bytes=32 * 1024 * 1024),
    )(scales_iw, xp, wt, bp)

    # qo.update: scale from the fused abs-max (no extra HBM pass over y).
    scale_o = jnp.maximum(jnp.max(amax), _EPS) / QMAX
    scales_o = jnp.stack([1.0 / scale_o, scale_o]).astype(jnp.float32)

    out_fq = functools.partial(_out_fq_kernel, qmax=QMAX)
    y_fq = pl.pallas_call(
        out_fq,
        out_shape=jax.ShapeDtypeStruct((mp, npad), jnp.float32),
        grid_spec=pltpu.PrefetchScalarGridSpec(
            num_scalar_prefetch=1,
            grid=(grid_m,),
            in_specs=[pl.BlockSpec((tm, npad), lambda i, s: (i, 0))],
            out_specs=pl.BlockSpec((tm, npad), lambda i, s: (i, 0)),
        ),
        compiler_params=pltpu.CompilerParams(
            dimension_semantics=("parallel",),
            vmem_limit_bytes=32 * 1024 * 1024),
    )(scales_o, y2d)

    return y_fq[:m, :n].reshape(*lead, n)


# ---------------- reference (plain JAX, module semantics) ----------------

def _fake_quant_ref(v, scale):
    q = jnp.round(jnp.clip(v / scale, -QMAX, QMAX))
    return scale * q


def reference_forward(x, weight, bias):
    scale_i = jnp.max(jnp.abs(x)) / QMAX
    scale_w = jnp.max(jnp.abs(weight)) / QMAX
    xq = _fake_quant_ref(x, scale_i)
    wq = _fake_quant_ref(weight, scale_w)
    y = jnp.matmul(xq, wq.T, precision=jax.lax.Precision.HIGHEST) + bias
    scale_o = jnp.max(jnp.abs(y)) / QMAX
    return _fake_quant_ref(y, scale_o)


if __name__ == "__main__":
    key = jax.random.PRNGKey(0)
    kx, kw, kb = jax.random.split(key, 3)

    # Small shapes consistent with a Linear(32 -> 64) over (batch=2, seq=8) tokens.
    B, S, IN_F, OUT_F = 2, 8, 32, 64
    x = jax.random.normal(kx, (B, S, IN_F), dtype=jnp.float32)
    bound = 1.0 / math.sqrt(IN_F)          # PyTorch nn.Linear default init range
    weight = jax.random.uniform(kw, (OUT_F, IN_F), minval=-bound, maxval=bound,
                                dtype=jnp.float32)
    bias = jax.random.uniform(kb, (OUT_F,), minval=-bound, maxval=bound,
                              dtype=jnp.float32)

    y = jax.block_until_ready(qlinear_forward(x, weight, bias))
    y_ref = jax.block_until_ready(reference_forward(x, weight, bias))

    y_np, y_ref_np = np.asarray(y), np.asarray(y_ref)
    # Outputs live on the qo quantization grid; the integer-bf16 kernel path and
    # the f32 reference may legitimately disagree by one quantum on values that
    # sit on a rounding boundary, so allow <= 1 quantum per element and require
    # a tiny mean error for the bulk.
    quantum = float(np.max(np.abs(y_ref_np))) / QMAX
    np.testing.assert_allclose(y_np, y_ref_np, rtol=0.0, atol=quantum + 1e-4)
    assert float(np.mean(np.abs(y_np - y_ref_np))) < 5e-4

    print("KERNEL_OK")
</pallas_src>

<mosaic_0001>
module attributes {stable_mosaic.version = 11 : i64} {
  func.func @_gemm_fq_kernel(%arg0: i32, %arg1: memref<3xf32, #tpu.memory_space<smem>>, %arg2: memref<16x128xf32, #tpu.memory_space<vmem>>, %arg3: memref<128x128xf32, #tpu.memory_space<vmem>>, %arg4: memref<1x128xf32, #tpu.memory_space<vmem>>, %arg5: memref<16x128xf32, #tpu.memory_space<vmem>>, %arg6: memref<1x128xf32, #tpu.memory_space<vmem>>, %arg7: memref<128x128xbf16, #tpu.memory_space<vmem>>) attributes {dimension_semantics = [#tpu.dimension_semantics<arbitrary>], iteration_bounds = array<i64: 1>, scalar_prefetch = 1 : i64, scratch_operands = 1 : i64, tpu.core_type = #tpu.core_type<tc>, window_params = [{transform_indices = @transform_0, window_bounds = array<i64: 16, 128>}, {pipeline_mode = #tpu.pipeline_mode<synchronous>, transform_indices = @transform_1, window_bounds = array<i64: 128, 128>}, {pipeline_mode = #tpu.pipeline_mode<synchronous>, transform_indices = @transform_2, window_bounds = array<i64: 1, 128>}, {transform_indices = @transform_3, window_bounds = array<i64: 16, 128>}, {pipeline_mode = #tpu.pipeline_mode<synchronous>, transform_indices = @transform_4, window_bounds = array<i64: 1, 128>}]} {
    %c0 = arith.constant 0 : index
    %0 = memref.load %arg1[%c0] : memref<3xf32, #tpu.memory_space<smem>>
    %c1 = arith.constant 1 : index
    %1 = memref.load %arg1[%c1] : memref<3xf32, #tpu.memory_space<smem>>
    %c2 = arith.constant 2 : index
    %2 = memref.load %arg1[%c2] : memref<3xf32, #tpu.memory_space<smem>>
    %c0_i32 = arith.constant 0 : i32
    %3 = arith.cmpi eq, %arg0, %c0_i32 : i32
    %4 = arith.extui %3 : i1 to i32
    %c0_i32_0 = arith.constant 0 : i32
    %5 = arith.cmpi ne, %4, %c0_i32_0 : i32
    scf.if %5 {
      %c0_18 = arith.constant 0 : index
      %c0_19 = arith.constant 0 : index
      %40 = vector.load %arg3[%c0_18, %c0_19] : memref<128x128xf32, #tpu.memory_space<vmem>>, vector<128x128xf32>
      %41 = vector.broadcast %1 : f32 to vector<128x128xf32>
      %42 = arith.mulf %40, %41 : vector<128x128xf32>
      %cst_20 = arith.constant -1.270000e+02 : f32
      %cst_21 = arith.constant 1.270000e+02 : f32
      %43 = vector.broadcast %cst_20 : f32 to vector<128x128xf32>
      %44 = arith.maximumf %43, %42 : vector<128x128xf32>
      %45 = vector.broadcast %cst_21 : f32 to vector<128x128xf32>
      %46 = arith.minimumf %45, %44 : vector<128x128xf32>
      %47 = math.roundeven %46 : vector<128x128xf32>
      %48 = arith.truncf %47 : vector<128x128xf32> to vector<128x128xbf16>
      %c0_22 = arith.constant 0 : index
      %c0_23 = arith.constant 0 : index
      %49 = vector.load %arg7[%c0_22, %c0_23] : memref<128x128xbf16, #tpu.memory_space<vmem>>, vector<128x128xbf16>
      tpu.vector_store %arg7[%c0_22, %c0_23], %48 {strides = array<i32>} : memref<128x128xbf16, #tpu.memory_space<vmem>>, vector<128x128xbf16>,
      %cst_24 = arith.constant 0.000000e+00 : f32
      %50 = vector.broadcast %cst_24 : f32 to vector<1x128xf32>
      %c0_25 = arith.constant 0 : index
      %c0_26 = arith.constant 0 : index
      %51 = vector.load %arg6[%c0_25, %c0_26] : memref<1x128xf32, #tpu.memory_space<vmem>>, vector<1x128xf32>
      tpu.vector_store %arg6[%c0_25, %c0_26], %50 {strides = array<i32>} : memref<1x128xf32, #tpu.memory_space<vmem>>, vector<1x128xf32>,
    } else {
    }
    %c0_1 = arith.constant 0 : index
    %c0_2 = arith.constant 0 : index
    %6 = vector.load %arg2[%c0_1, %c0_2] : memref<16x128xf32, #tpu.memory_space<vmem>>, vector<16x128xf32>
    %7 = vector.broadcast %0 : f32 to vector<16x128xf32>
    %8 = arith.mulf %6, %7 : vector<16x128xf32>
    %cst = arith.constant -1.270000e+02 : f32
    %cst_3 = arith.constant 1.270000e+02 : f32
    %9 = vector.broadcast %cst : f32 to vector<16x128xf32>
    %10 = arith.maximumf %9, %8 : vector<16x128xf32>
    %11 = vector.broadcast %cst_3 : f32 to vector<16x128xf32>
    %12 = arith.minimumf %11, %10 : vector<16x128xf32>
    %13 = math.roundeven %12 : vector<16x128xf32>
    %14 = arith.truncf %13 : vector<16x128xf32> to vector<16x128xbf16>
    %c0_4 = arith.constant 0 : index
    %c0_5 = arith.constant 0 : index
    %15 = vector.load %arg7[%c0_4, %c0_5] : memref<128x128xbf16, #tpu.memory_space<vmem>>, vector<128x128xbf16>
    %cst_6 = arith.constant dense<0.000000e+00> : vector<16x128xf32>
    %16 = tpu.matmul %14, %15, %cst_6 {dimension_numbers = #tpu.dot_dimension_numbers<[1], [0], [0], [1], [0, 0, 1, 1], [], []>} : vector<16x128xbf16>, vector<128x128xbf16>, vector<16x128xf32> -> vector<16x128xf32>
    %17 = vector.broadcast %2 : f32 to vector<16x128xf32>
    %18 = arith.mulf %16, %17 : vector<16x128xf32>
    %c0_7 = arith.constant 0 : index
    %c0_8 = arith.constant 0 : index
    %19 = vector.load %arg4[%c0_7, %c0_8] : memref<1x128xf32, #tpu.memory_space<vmem>>, vector<1x128xf32>
    %20 = vector.broadcast %19 : vector<1x128xf32> to vector<16x128xf32>
    %21 = arith.addf %18, %20 : vector<16x128xf32>
    %c0_9 = arith.constant 0 : index
    %c0_10 = arith.constant 0 : index
    %22 = vector.load %arg5[%c0_9, %c0_10] : memref<16x128xf32, #tpu.memory_space<vmem>>, vector<16x128xf32>
    tpu.vector_store %arg5[%c0_9, %c0_10], %21 {strides = array<i32>} : memref<16x128xf32, #tpu.memory_space<vmem>>, vector<16x128xf32>,
    %23 = tpu.iota {dimensions = array<i32: 0>} : vector<16x128xi32>
    %c16_i32 = arith.constant 16 : i32
    %24 = arith.muli %arg0, %c16_i32 : i32
    %25 = vector.broadcast %24 : i32 to vector<16x128xi32>
    %26 = arith.addi %23, %25 : vector<16x128xi32>
    %c16_i32_11 = arith.constant 16 : i32
    %27 = vector.broadcast %c16_i32_11 : i32 to vector<16x128xi32>
    %28 = arith.cmpi slt, %26, %27 : vector<16x128xi32>
    %29 = math.absf %21 : vector<16x128xf32>
    %cst_12 = arith.constant 0.000000e+00 : f32
    %30 = vector.broadcast %cst_12 : f32 to vector<16x128xf32>
    %31 = arith.select %28, %29, %30 : vector<16x128xi1>, vector<16x128xf32>
    %32 = vector.shape_cast %31 : vector<16x128xf32> to vector<1x16x128xf32>
    %cst_13 = arith.constant dense<0xFF800000> : vector<1xf32>
    %33 = vector.multi_reduction <maximumf>, %32, %cst_13 [1, 2] : vector<1x16x128xf32> to vector<1xf32>
    %34 = vector.shape_cast %33 : vector<1xf32> to vector<1x1x1xf32>
    %35 = vector.extract %34[0, 0, 0] : f32 from vector<1x1x1xf32>
    %c0_14 = arith.constant 0 : index
    %c0_15 = arith.constant 0 : index
    %36 = vector.load %arg6[%c0_14, %c0_15] : memref<1x128xf32, #tpu.memory_space<vmem>>, vector<1x128xf32>
    %37 = vector.broadcast %35 : f32 to vector<1x128xf32>
    %38 = arith.maximumf %36, %37 : vector<1x128xf32>
    %c0_16 = arith.constant 0 : index
    %c0_17 = arith.constant 0 : index
    %39 = vector.load %arg6[%c0_16, %c0_17] : memref<1x128xf32, #tpu.memory_space<vmem>>, vector<1x128xf32>
    tpu.vector_store %arg6[%c0_16, %c0_17], %38 {strides = array<i32>} : memref<1x128xf32, #tpu.memory_space<vmem>>, vector<1x128xf32>,
    return
  }
  func.func @transform_0(%arg0: i32, %arg1: memref<3xf32, #tpu.memory_space<smem>>) -> (i32, i32) {
    %c0_i32 = arith.constant 0 : i32
    %c0_i32_0 = arith.constant 0 : i32
    return %arg0, %c0_i32 : i32, i32
  }
  func.func @transform_1(%arg0: i32, %arg1: memref<3xf32, #tpu.memory_space<smem>>) -> (i32, i32) {
    %c0_i32 = arith.constant 0 : i32
    %c0_i32_0 = arith.constant 0 : i32
    %c0_i32_1 = arith.constant 0 : i32
    return %c0_i32, %c0_i32_0 : i32, i32
  }
  func.func @transform_2(%arg0: i32, %arg1: memref<3xf32, #tpu.memory_space<smem>>) -> (i32, i32) {
    %c0_i32 = arith.constant 0 : i32
    %c0_i32_0 = arith.constant 0 : i32
    %c0_i32_1 = arith.constant 0 : i32
    return %c0_i32, %c0_i32_0 : i32, i32
  }
  func.func @transform_3(%arg0: i32, %arg1: memref<3xf32, #tpu.memory_space<smem>>) -> (i32, i32) {
    %c0_i32 = arith.constant 0 : i32
    %c0_i32_0 = arith.constant 0 : i32
    return %arg0, %c0_i32 : i32, i32
  }
  func.func @transform_4(%arg0: i32, %arg1: memref<3xf32, #tpu.memory_space<smem>>) -> (i32, i32) {
    %c0_i32 = arith.constant 0 : i32
    %c0_i32_0 = arith.constant 0 : i32
    %c0_i32_1 = arith.constant 0 : i32
    return %c0_i32, %c0_i32_0 : i32, i32
  }
}

</mosaic_0001>

<bundles_post_ra>
// kernel: tpu_custom_call.1
= control target key start
LH: loop header
LB: loop body
LE: loop exit
PB: predicated region body
PF: predicated region fallthrough
CT: control target
= control target key end

     0   :  { %s620_s0 = inlined_call_operand.hbm [shape: f32[3], index: 0, kind: input, shape index: {}]   ;;  %s621_s1 = inlined_call_operand.hbm [shape: f32[16,128], index: 1, kind: input, shape index: {}]   ;;  %s622_s2 = inlined_call_operand.hbm [shape: f32[128,128], index: 2, kind: input, shape index: {}]   ;;  %s623_s3 = inlined_call_operand.vmem [shape: f32[1,128], index: 3, kind: input, shape index: {}]   ;;  %s624_s4 = inlined_call_operand.hbm [shape: f32[16,128], index: 4, kind: output, shape index: {0}]   ;;  %s625_s5 = inlined_call_operand.hbm [shape: f32[1,128], index: 5, kind: output, shape index: {1}]  }
   0x1   :  { %s370_s20 = scalar_lea.hbm %s620_s0, 16 }
   0x2   :  { %p371_p0 = scmp.ne.s32.totalorder %s620_s0, %s370_s20  ;;  %p374_p1 = scmp.lt.u32.totalorder %s370_s20, %s620_s0 }
   0x4   :  { %p376_p2 = pnand %p374_p1, %p371_p0 }
   0x6   :  { %379 = shalt.err (!%p376_p2)  }
   0x7   :  { %s478_s25 = smov [#allocation4]  }
   0x8   :  { %12 = dma.hbm_to_smem %s620_s0, 16, %s478_s25, [#allocation3] }
   0x9   :  { %468 = dma.done.wait [#allocation3], 16 }
   0xa   :  { %469 = vsyncadd [#allocation3], 4294967280 }
   0xb   :  { %14 = sfence }
   0xc   :  { %15 = vsyncpa [#allocation6], 0 }
   0xd   :  { %16 = vsyncpa [#allocation9], 0 }
   0xe   :  { %17 = vsyncpa [#allocation7], 0 }
   0xf   :  { %18 = vsyncpa [#allocation12], 0  ;;  %s479_s28 = smov [#allocation5]   ;;  %s380_s7 = scalar_lea.hbm %s621_s1, 256 }
  0x10   :  { %s24_s29 = sshll.u32 %s479_s28, 4  ;;  %p381_p3 = scmp.ne.s32.totalorder %s621_s1, %s380_s7  ;;  %s25_s29 = int_to_ptr.vmem [resolvable:$true] %s24_s29 }
  0x11   :  { %p384_p4 = scmp.lt.u32.totalorder %s380_s7, %s621_s1 }
  0x13   :  { %p386_p5 = pnand %p384_p4, %p381_p3 }
  0x15   :  { %389 = shalt.err (!%p386_p5)
}
  0x16   :  { %s390_s11 = scalar_lea.vmem %s25_s29, 256  ;;  %p395_p7 = scmp.lt.s32.totalorder %s25_s29, %s25_s29 }
  0x17   :  { %p391_p6 = scmp.ne.s32.totalorder %s25_s29, %s390_s11  ;;  %p396_p8 = scmp.lt.s32.totalorder %s390_s11, %s390_s11 }
  0x19   :  { %p397_p9 = por %p396_p8, %p395_p7 }
  0x1b   :  { %p398_p10 = pnand %p397_p9, %p391_p6 }
  0x1d   :  { %401 = shalt.err (!%p398_p10)
}
  0x1e   :  { %s480_s12 = smov 128   ;;  %s481_s13 = smov 8  }
  0x1f   :  { %30 = dma.hbm_to_vmem [thread:$0]  %s621_s1, 256, %s25_s29, [#allocation6], %s480_s12, %s480_s12, %s481_s13  }
  0x20   :  { %s482_s16 = smov [#allocation8]   ;;  %s402_s20 = scalar_lea.hbm %s622_s2, 2048 }
  0x21   :  { %s36_s17 = sshll.u32 %s482_s16, 4  ;;  %p403_p11 = scmp.ne.s32.totalorder %s622_s2, %s402_s20  ;;  %s37_s17 = int_to_ptr.vmem [resolvable:$true] %s36_s17 }
  0x22   :  { %p406_p12 = scmp.lt.u32.totalorder %s402_s20, %s622_s2 }
  0x24   :  { %p408_p13 = pnand %p406_p12, %p403_p11 }
  0x26   :  { %411 = shalt.err (!%p408_p13)
}
  0x27   :  { %s412_s25 = scalar_lea.vmem %s37_s17, 2048  ;;  %p417_p1 = scmp.lt.s32.totalorder %s37_s17, %s37_s17 }
  0x28   :  { %p413_p0 = scmp.ne.s32.totalorder %s37_s17, %s412_s25  ;;  %p418_p2 = scmp.lt.s32.totalorder %s412_s25, %s412_s25 }
  0x2a   :  { %p419_p3 = por %p418_p2, %p417_p1 }
  0x2c   :  { %p420_p4 = pnand %p419_p3, %p413_p0 }
  0x2e   :  { %423 = shalt.err (!%p420_p4)
}
  0x2f   :  { %42 = dma.hbm_to_vmem [thread:$0]  %s622_s2, 2048, %s37_s17, [#allocation9], %s480_s12, %s480_s12, %s481_s13  }
  0x30   :  { %470 = dma.done.wait [#allocation6], 256  }
  0x31   :  { %471 = vsyncadd [#allocation6], 4294967040 }
  0x32   :  { %472 = dma.done.wait [#allocation9], 2048  }
  0x33   :  { %473 = vsyncadd [#allocation9], 4294965248  ;;  %v483_v0 = vmov 0.0   ;;  %s291_s27 = sld [smem:[#allocation4 + $0x1]]  ;;  %vm484_vm0 = vmmov 0   ;;  %v59_v1 = vld [vmem:[#allocation8] sm:$0xff] }
  0x34   :  { %321 = vmatprep.subr.bf16.mxu0 %v483_v0  ;;  %156 = vst [vmem:[#allocation11] sm:$0x1] %v483_v0  ;;  %337 = vmatprep.mubr.msk.bf16.mxu0 %vm484_vm0, %v483_v0  ;;  %v60_v2 = vld [vmem:[#allocation8 + $0x8] sm:$0xff]  ;;  %v61_v4 = vld [vmem:[#allocation8 + $0x10] sm:$0xff]  ;;  %v62_v7 = vld [vmem:[#allocation8 + $0x18] sm:$0xff]  ;;  %s576_s2 = sld [smem:[#allocation4]] }
  0x35   :  { %v63_v9 = vld [vmem:[#allocation8 + $0x20] sm:$0xff]  ;;  %v64_v10 = vld [vmem:[#allocation8 + $0x28] sm:$0xff]  ;;  %v65_v14 = vld [vmem:[#allocation8 + $0x30] sm:$0xff]  ;;  %s292_s28 = sld [smem:[#allocation4 + $0x2]]  ;;  %s485_s6 = smov [#allocation10]  }
  0x36   :  { %v66_v15 = vld [vmem:[#allocation8 + $0x38] sm:$0xff]  ;;  %v67_v28 = vld [vmem:[#allocation8 + $0x40] sm:$0xff]  ;;  %v68_v29 = vld [vmem:[#allocation8 + $0x48] sm:$0xff]  ;;  %s264_s7 = sshll.u32 %s485_s6, 4  ;;  %s265_s7 = int_to_ptr.vmem [resolvable:$true] %s264_s7 }
  0x37   :  { %v69_v38 = vld [vmem:[#allocation8 + $0x50] sm:$0xff]  ;;  %v70_v39 = vld [vmem:[#allocation8 + $0x58] sm:$0xff]  ;;  %v71_v47 = vld [vmem:[#allocation8 + $0x60] sm:$0xff]  ;;  %s424_s8 = scalar_lea.vmem %s265_s7, 256  ;;  %p429_p6 = scmp.lt.s32.totalorder %s265_s7, %s265_s7 }
  0x38   :  { %v72_v48 = vld [vmem:[#allocation8 + $0x68] sm:$0xff]  ;;  %v73_v56 = vld [vmem:[#allocation8 + $0x70] sm:$0xff]  ;;  %v74_v57 = vld [vmem:[#allocation8 + $0x78] sm:$0xff]  ;;  %p425_p5 = scmp.ne.s32.totalorder %s265_s7, %s424_s8  ;;  %p430_p7 = scmp.lt.s32.totalorder %s424_s8, %s424_s8 }
  0x39   :  { %v562_v3 = vstv %s291_s27 }
  0x3a   :  { %v76_v5 = vmul.f32 %v562_v3, %v59_v1  ;;  %v77_v6 = vmul.f32 %v562_v3, %v60_v2  ;;  %v78_v8 = vmul.f32 %v562_v3, %v61_v4  ;;  %v79_v11 = vmul.f32 %v562_v3, %v62_v7  ;;  %v157_v4 = vld [vmem:[#allocation5] sm:$0xff]  ;;  %p431_p8 = por %p430_p7, %p429_p6 }
  0x3b   :  { %v80_v12 = vmul.f32 %v562_v3, %v63_v9  ;;  %v81_v13 = vmul.f32 %v562_v3, %v64_v10  ;;  %v82_v21 = vmul.f32 %v562_v3, %v65_v14  ;;  %v83_v22 = vmul.f32 %v562_v3, %v66_v15 }
  0x3c   :  { %v293_v16 = vclamps-f32 %v76_v5, 127.0  ;;  %v294_v17 = vclamps-f32 %v77_v6, 127.0  ;;  %v295_v18 = vclamps-f32 %v78_v8, 127.0  ;;  %v296_v19 = vclamps-f32 %v79_v11, 127.0  ;;  %v158_v5 = vld [vmem:[#allocation5 + $0x8] sm:$0xff]  ;;  %p432_p9 = pnand %p431_p8, %p425_p5 }
  0x3d   :  { %v297_v20 = vclamps-f32 %v80_v12, 127.0  ;;  %v298_v26 = vclamps-f32 %v81_v13, 127.0  ;;  %v299_v32 = vclamps-f32 %v82_v21, 127.0  ;;  %v300_v33 = vclamps-f32 %v83_v22, 127.0 }
  0x3e   :  { %v341_v23 = vround.rtne.f32 %v293_v16  ;;  %v342_v24 = vround.rtne.f32 %v294_v17  ;;  %v343_v25 = vround.rtne.f32 %v295_v18  ;;  %v344_v27 = vround.rtne.f32 %v296_v19 }
  0x3f   :  { %v345_v31 = vround.rtne.f32 %v297_v20  ;;  %v346_v35 = vround.rtne.f32 %v298_v26  ;;  %v84_v36 = vmul.f32 %v562_v3, %v67_v28  ;;  %v85_v37 = vmul.f32 %v562_v3, %v68_v29 }
  0x40   :  { %v140_v30 = vpack.c.bf16 %v342_v24, %v341_v23  ;;  %v141_v34 = vpack.c.bf16 %v344_v27, %v343_v25  ;;  %v347_v40 = vround.rtne.f32 %v299_v32  ;;  %v348_v41 = vround.rtne.f32 %v300_v33  ;;  %v311_v23 = vld [vmem:[%s623_s3] ss:$0 sm:$0xff] }
  0x41   :  { %v86_v42 = vmul.f32 %v562_v3, %v69_v38  ;;  %v142_v43 = vpack.c.bf16 %v346_v35, %v345_v31  ;;  %v301_v44 = vclamps-f32 %v84_v36, 127.0  ;;  %v302_v45 = vclamps-f32 %v85_v37, 127.0 }
  0x42   :  { %322 = vmatpush3.bf16.msra.mxu0 %v140_v30  ;;  %v87_v46 = vmul.f32 %v562_v3, %v70_v39  ;;  %v143_v49 = vpack.c.bf16 %v348_v41, %v347_v40  ;;  %v88_v51 = vmul.f32 %v562_v3, %v71_v47  ;;  %v89_v55 = vmul.f32 %v562_v3, %v72_v48 }
  0x43   :  { %323 = vmatprep.subr.bf16.mxu0 %v483_v0  ;;  %v303_v50 = vclamps-f32 %v86_v42, 127.0  ;;  %v349_v52 = vround.rtne.f32 %v301_v44  ;;  %v350_v53 = vround.rtne.f32 %v302_v45  ;;  %v90_v60 = vmul.f32 %v562_v3, %v73_v56 }
  0x44   :  { %v304_v54 = vclamps-f32 %v87_v46, 127.0  ;;  %v305_v59 = vclamps-f32 %v88_v51, 127.0  ;;  %v159_v61 = vstv %s576_s2  ;;  %v306_v1 = vclamps-f32 %v89_v55, 127.0 }
  0x45   :  { %v351_v58 = vround.rtne.f32 %v303_v50  ;;  %v144_v62 = vpack.c.bf16 %v350_v53, %v349_v52  ;;  %v91_v2 = vmul.f32 %v562_v3, %v74_v57  ;;  %v307_v6 = vclamps-f32 %v90_v60, 127.0 }
  0x46   :  { %324 = vmatpush3.bf16.msra.mxu0 %v141_v34  ;;  %v352_v63 = vround.rtne.f32 %v304_v54  ;;  %v160_v7 = vmul.f32 %v159_v61, %v157_v4  ;;  %v161_v8 = vmul.f32 %v159_v61, %v158_v5  ;;  %v353_v10 = vround.rtne.f32 %v305_v59 }
  0x47   :  { %325 = vmatprep.subr.bf16.mxu0 %v483_v0  ;;  %v354_v11 = vround.rtne.f32 %v306_v1  ;;  %v308_v12 = vclamps-f32 %v91_v2, 127.0  ;;  %v355_v16 = vround.rtne.f32 %v307_v6  ;;  %v218_v21 = vstv %s292_s28 }
  0x48   :  { %v145_v9 = vpack.c.bf16 %v352_v63, %v351_v58  ;;  %v309_v13 = vclamps-f32 %v160_v7, 127.0  ;;  %v310_v14 = vclamps-f32 %v161_v8, 127.0 }
  0x49   :  { %v146_v15 = vpack.c.bf16 %v354_v11, %v353_v10  ;;  %v356_v3 = vround.rtne.f32 %v308_v12 }
  0x4a   :  { %326 = vmatpush3.bf16.msra.mxu0 %v142_v43  ;;  %v357_v17 = vround.rtne.f32 %v309_v13  ;;  %v358_v18 = vround.rtne.f32 %v310_v14 }
  0x4b   :  { %327 = vmatprep.subr.bf16.mxu0 %v483_v0  ;;  %v147_v19 = vpack.c.bf16 %v356_v3, %v355_v16 }
  0x4c   :  { %v168_v20 = vpack.c.bf16 %v358_v18, %v357_v17 }
  0x4e   :  { %328 = vmatpush3.bf16.msra.mxu0 %v143_v49 }
  0x4f   :  { %329 = vmatprep.subr.bf16.mxu0 %v483_v0 }
  0x52   :  { %330 = vmatpush3.bf16.msra.mxu0 %v144_v62 }
  0x53   :  { %331 = vmatprep.subr.bf16.mxu0 %v483_v0 }
  0x56   :  { %332 = vmatpush3.bf16.msra.mxu0 %v145_v9 }
  0x57   :  { %333 = vmatprep.subr.bf16.mxu0 %v483_v0 }
  0x5a   :  { %334 = vmatpush3.bf16.msra.mxu0 %v146_v15 }
  0x5b   :  { %335 = vmatprep.subr.bf16.mxu0 %v483_v0 }
  0x5e   :  { %336 = vmatpush3.bf16.msra.mxu0 %v147_v19 }
  0x61   :  { %338 = vmatmul.mubr.bf16.vlgmr.msra.gmra.mrb[0].mxu0 %v168_v20 }
 0x134   :  { %v211_v22 = vpop.f32.mrb[0].mxu0 }
 0x135   :  { %v219_v24 = vmul.f32 %v218_v21, %v211_v22  ;;  %v339_v25 = vpop.f32.mrb[1].mxu0 }
 0x136   :  { %v214_v26 = vpop.f32.mrb[2].mxu0 }
 0x137   :  { %v228_v27 = vadd.f32 %v311_v23, %v219_v24  ;;  %v220_v28 = vmul.f32 %v218_v21, %v214_v26  ;;  %v340_v29 = vpop.f32.mrb[3].mxu0 }
 0x139   :  { %230 = vst [vmem:[#allocation10] sm:$0xff] %v228_v27  ;;  %v229_v30 = vadd.f32 %v311_v23, %v220_v28  ;;  %v241_v0 = vand.u32 2147483647, %v228_v27 }
 0x13b   :  { %231 = vst [vmem:[#allocation10 + $0x8] sm:$0xff] %v229_v30  ;;  %v242_v31 = vand.u32 2147483647, %v229_v30 }
 0x13d   :  { %v245_v32 = vmax.f32.f32 %v241_v0, %v242_v31 }
 0x13f   :  { %246 = vmax.xlane.f32.xlu0 %v245_v32 }
 0x140   :  { %435 = shalt.err (!%p432_p9)
}
 0x141   :  { %s436_s10 = scalar_lea.hbm %s624_s4, 256 }
 0x142   :  { %p437_p10 = scmp.ne.s32.totalorder %s624_s4, %s436_s10  ;;  %p440_p11 = scmp.lt.u32.totalorder %s436_s10, %s624_s4 }
 0x144   :  { %p442_p12 = pnand %p440_p11, %p437_p10 }
 0x146   :  { %445 = shalt.err (!%p442_p12)
}
 0x147   :  { %270 = dma.vmem_to_hbm [thread:$0]  %s265_s7, 256, %s624_s4, [#allocation7], %s480_s12, %s480_s12, %s481_s13   ;;  %v255_v40 = vld [vmem:[#allocation11] sm:$0x1] }
 0x148   :  { %s486_s18 = smov [#allocation11]  }
 0x149   :  { %s277_s19 = sshll.u32 %s486_s18, 4  ;;  %s278_s19 = int_to_ptr.vmem [resolvable:$true] %s277_s19 }
 0x14a   :  { %s446_s21 = scalar_lea.vmem %s278_s19, 16  ;;  %s450_s22 = scalar_lea.vmem %s278_s19, 32 }
 0x14b   :  { %p447_p13 = scmp.ne.s32.totalorder %s278_s19, %s446_s21  ;;  %p451_p0 = scmp.lt.s32.totalorder %s278_s19, %s278_s19 }
 0x14c   :  { %p452_p1 = scmp.lt.s32.totalorder %s450_s22, %s446_s21 }
 0x14e   :  { %p453_p2 = por %p452_p1, %p451_p0 }
 0x150   :  { %p454_p3 = pnand %p453_p2, %p447_p13 }
 0x1cc   :  { %v247_v33 = vpop.xlane.xlu0 %246 }
 0x1cd   :  { %v248_v34 = vrot.slane %v247_v33, 4 }
 0x1cf   :  { %v249_v35 = vmax.f32 %v247_v33, %v248_v34 }
 0x1d1   :  { %v250_v36 = vrot.slane %v249_v35, 2 }
 0x1d3   :  { %v251_v37 = vmax.f32 %v249_v35, %v250_v36 }
 0x1d5   :  { %v252_v38 = vrot.slane %v251_v37, 1 }
 0x1d7   :  { %v253_v39 = vmax.f32 %v251_v37, %v252_v38 }
 0x1d9   :  { %359 = vpush %v253_v39 }
 0x20a   :  { %s360_s20 = spop %359 }
 0x20b   :  { %v256_v41 = vstv %s360_s20 }
 0x20c   :  { %v257_v42 = vmax.f32 %v255_v40, %v256_v41 }
 0x20e   :  { %258 = vst [vmem:[#allocation11] sm:$0x1] %v257_v42 }
 0x20f   :  { %457 = shalt.err (!%p454_p3)
}
 0x210   :  { %s458_s13 = scalar_lea.hbm %s625_s5, 16 }
 0x211   :  { %p459_p4 = scmp.ne.s32.totalorder %s625_s5, %s458_s13  ;;  %p462_p5 = scmp.lt.u32.totalorder %s458_s13, %s625_s5 }
 0x213   :  { %p464_p6 = pnand %p462_p5, %p459_p4 }
 0x215   :  { %467 = shalt.err (!%p464_p6)
}
 0x216   :  { %280 = dma.vmem_to_hbm [thread:$0]  %s278_s19, 16, %s625_s5, [#allocation12]  }
 0x217   :  { %474 = dma.done.wait [#allocation7], 256  }
 0x218   :  { %475 = vsyncadd [#allocation7], 4294967040 }
 0x219   :  { %476 = dma.done.wait [#allocation12], 16  }
 0x21a   :  { %477 = vsyncadd [#allocation12], 4294967280 }
 0x21b   :  { %287 = vsyncpa [#allocation6], 1 }
 0x21c   :  { %288 = vsyncpa [#allocation9], 1 }
 0x21d   :  { %289 = vsyncpa [#allocation7], 1 }
 0x21e   :  { %290 = vsyncpa [#allocation12], 1 }

</bundles_post_ra>
